<compile_context>
chip_gen: v5e
topology: v5e:2x2
jax: 0.10.0
libtpu: 0.0.40
codegen_flags: <defaults>
</compile_context>

<pallas_src>
import functools

import jax
import jax.numpy as jnp
from jax.experimental import pallas as pl
from jax.experimental.pallas import tpu as pltpu


def _round_up(x, m):
    return ((x + m - 1) // m) * m


# ---------------------------------------------------------------------------
# Fused im2col + conv-as-matmul + BN + ReLU kernel.
#
# Per grid step (n, j) the kernel produces one lane-dense tile of the flat
# feature map out[n, :, j*TP:(j+1)*TP] (layout [N, C_out, H*W], i.e. NCHW with
# H,W merged, so the final NCHW reshape in the wrapper is a free view).
#
#   xf_ref    : (C_in, LF)       bf16  per-image input, vertically zero-padded,
#                                      flattened to [(H+2)*W] with a 1-column
#                                      left guard and zero tail.  Resident: the
#                                      same block is reused for every j.
#   wk_ref    : (9, C_out, C_in) bf16  conv taps (t = ky*3+kx), BN scale folded.
#   shift_ref : (C_out, 1)       f32   BN shift + conv bias (folded).
#   out_ref   : (C_out, TP)      f32   one flat-HW tile of the feature map.
#
# Tap (ky, kx) of output pixel p = y*W + x lives at flat input index
# 1 + p + ky*W + (kx-1), i.e. a *static* shift of the tile's window, so the
# whole im2col reduces to 9 shifted slices + 9 small MXU dots.  Horizontal
# zero-padding is emulated by zeroing the kx=0 / kx=2 contributions on the
# x==0 / x==W-1 output columns (lane masks from a broadcasted iota).
# ---------------------------------------------------------------------------
def _fused_conv_bn_relu_kernel(xf_ref, wk_ref, shift_ref, out_ref, *,
                               width, grid_p):
    c_out, tp = out_ref.shape

    if grid_p == 1:
        base = 0                                           # fully static path
        def slab(o):                                       # static ref slice
            return xf_ref[:, o:o + tp]
    else:
        base = pl.multiple_of(pl.program_id(1) * tp, 128)  # lane-aligned start
        win = xf_ref[:, pl.ds(base, tp + 2 * width + 2)]   # halo window
        def slab(o):                                       # static value slice
            return win[:, o:o + tp]

    # x-coordinate of every output column in this tile (for the border masks).
    xpos = (base + jax.lax.broadcasted_iota(jnp.int32, (1, tp), 1)) % width

    acc = jnp.zeros((c_out, tp), jnp.float32)
    for kx in range(3):
        part = jnp.zeros((c_out, tp), jnp.float32)
        for ky in range(3):
            t = ky * 3 + kx
            o = 1 + ky * width + (kx - 1)                  # static shift (>=0)
            part = part + jnp.dot(wk_ref[t], slab(o),
                                  preferred_element_type=jnp.float32)  # MXU
        if kx == 0:        # tap column x-1: must be zero-pad at x == 0
            part = jnp.where(xpos == 0, 0.0, part)
        elif kx == 2:      # tap column x+1: must be zero-pad at x == W-1
            part = jnp.where(xpos == width - 1, 0.0, part)
        acc = acc + part

    y = acc + shift_ref[...]                               # f32 epilogue (v5e-safe)
    out_ref[...] = jnp.maximum(y, 0.0).astype(out_ref.dtype)


def _choose_tile_hw(hw, batch, cap=16384):
    """Lane tile over the flat H*W output axis.

    Big tiles (cap 16384, ~9 MiB of double-buffered VMEM worst case) keep the
    kernel near the HBM roofline; batch >= 2 already gives >= 2 grid steps for
    v7x's two TensorCores, otherwise the HW axis is split in two.
    """
    if hw <= 128:
        return hw                      # full extent (legal: equals array dim)
    tp = _round_up(hw, 128)
    if batch < 2:
        tp = _round_up(pl.cdiv(hw, 2), 128)
    return int(max(128, min(cap, tp)))


def _fused_feature_map(xf, wk, shift, *, height, width, tile_hw):
    """xf: [N, C_in, LF] bf16, wk: [9, C_out, C_in] bf16, shift: [C_out, 1] f32
    -> [N, C_out, H*W] f32 = relu(conv3x3(x) * bn_scale + shift), NCHW-flat."""
    n, c_in, lf = xf.shape
    _, c_out, _ = wk.shape
    hw = height * width
    grid_p = pl.cdiv(hw, tile_hw)

    kernel = functools.partial(_fused_conv_bn_relu_kernel,
                               width=width, grid_p=grid_p)
    flops = 2 * n * hw * c_out * c_in * 9
    bytes_accessed = (xf.size * 2 + wk.size * 2 + shift.size * 4
                      + n * c_out * hw * 4)

    return pl.pallas_call(
        kernel,
        out_shape=jax.ShapeDtypeStruct((n, c_out, hw), jnp.float32),
        grid_spec=pltpu.PrefetchScalarGridSpec(
            num_scalar_prefetch=0,
            grid=(n, grid_p),
            in_specs=[
                # Per-image flat input, resident across all j steps.
                pl.BlockSpec((None, c_in, lf), lambda b, j: (b, 0, 0)),
                # Conv taps (BN scale folded) and fused shift: fetched once.
                pl.BlockSpec((9, c_out, c_in), lambda b, j: (0, 0, 0)),
                pl.BlockSpec((c_out, 1), lambda b, j: (0, 0)),
            ],
            out_specs=pl.BlockSpec((None, c_out, tile_hw),
                                   lambda b, j: (b, 0, j)),
        ),
        compiler_params=pltpu.CompilerParams(
            dimension_semantics=("parallel", "parallel")),
        cost_estimate=pl.CostEstimate(flops=flops, transcendentals=0,
                                      bytes_accessed=int(bytes_accessed)),
    )(xf, wk, shift)


# ---------------------------------------------------------------------------
# Module wrapper (synthetic backbone, deterministic params)
# ---------------------------------------------------------------------------
class VisualClassifyPallas:
    def __init__(self, c_in=4, c_out=8, fc_init_std=0.01, key=None):
        if key is None:
            key = jax.random.PRNGKey(0)
        kw, kb = jax.random.split(key)
        self.c_in, self.c_out = c_in, c_out
        # Conv2d weight [C_out, C_in, 3, 3], bias [C_out]  (init_weights-style
        # gaussian init with std = cfg.MODEL.FC_INIT_STD; deterministic).
        self.w = (fc_init_std *
                  jax.random.normal(kw, (c_out, c_in, 3, 3), jnp.float32))
        self.b = (fc_init_std *
                  jax.random.normal(kb, (c_out,), jnp.float32))
        # BatchNorm (eval): gamma=1, beta=0, running_mean=0, running_var=1.
        eps = 1e-5
        gamma = jnp.ones((c_out,), jnp.float32)
        beta = jnp.zeros((c_out,), jnp.float32)
        r_mean = jnp.zeros((c_out,), jnp.float32)
        r_var = jnp.ones((c_out,), jnp.float32)
        bn_scale = gamma / jnp.sqrt(r_var + eps)                     # [C_out]
        # Per-tap weights [t=ky*3+kx, C_out, C_in] with BN scale pre-folded,
        # cast once to bf16 (MXU operand).
        w_taps = jnp.transpose(self.w, (2, 3, 0, 1)).reshape(9, c_out, c_in)
        self.w_taps = (w_taps * bn_scale[None, :, None]).astype(jnp.bfloat16)
        # Conv bias folded into the BN shift -> single f32 add in the epilogue.
        self.shift = (beta - r_mean * bn_scale + self.b * bn_scale
                      ).reshape(c_out, 1).astype(jnp.float32)        # [C_out,1]

    @functools.partial(jax.jit, static_argnums=0)
    def __call__(self, visual_clip):
        """visual_clip: NCHW float32 [N, C_in, H, W] -> (feature_map,) NCHW."""
        n, c, h, w = visual_clip.shape
        assert c == self.c_in
        hw = h * w
        hp = h + 2
        tile_hw = _choose_tile_hw(hw, n)
        grid_p = pl.cdiv(hw, tile_hw)

        # Pre-kernel glue: one fused pad+cast copy of the small input.
        #   * early bf16 cast (halves the pre-kernel HBM bytes),
        #   * vertical zero-pad only (horizontal pad is emulated in-kernel),
        #   * flatten spatial, prepend a 1-column guard and a zero tail so the
        #     in-kernel tap windows never read out of bounds.
        lf = _round_up(max(grid_p * tile_hw + 2 * w + 2, 1 + hp * w), 128)
        xb = visual_clip.astype(jnp.bfloat16)
        xv = jnp.pad(xb, ((0, 0), (0, 0), (1, 1), (0, 0)))            # [N,C,H+2,W]
        xf = jnp.pad(xv.reshape(n, c, hp * w),
                     ((0, 0), (0, 0), (1, lf - 1 - hp * w)))          # [N,C,LF]

        out = _fused_feature_map(xf, self.w_taps, self.shift,
                                 height=h, width=w, tile_hw=tile_hw)  # [N,C_out,HW] f32

        fmap = out.reshape(n, self.c_out, h, w)   # free view -> NCHW, no copy
        return (fmap,)   # forward returns a 1-tuple, like the nn.Module


# ---------------------------------------------------------------------------
# References for self-check
# ---------------------------------------------------------------------------
def _reference_same_math(model, x_nchw):
    """Same math as the kernel (bf16 conv inputs, f32 accumulation)."""
    n, c, h, w = x_nchw.shape
    xb = x_nchw.astype(jnp.bfloat16)
    xp = jnp.pad(xb, ((0, 0), (0, 0), (1, 1), (1, 1)))
    taps = jnp.stack([xp[:, :, ky:ky + h, kx:kx + w]
                      for ky in range(3) for kx in range(3)], axis=0)  # [9,N,C,H,W]
    y = jnp.einsum("tnchw,toc->nohw", taps.astype(jnp.float32),
                   model.w_taps.astype(jnp.float32))
    y = y + model.shift.reshape(1, -1, 1, 1)
    return jnp.maximum(y, 0.0)


def _reference_f32(model, x_nchw):
    """Full-precision conv + BN(eval) + ReLU reference."""
    y = jax.lax.conv_general_dilated(
        x_nchw, model.w, window_strides=(1, 1), padding=((1, 1), (1, 1)),
        dimension_numbers=("NCHW", "OIHW", "NCHW"))
    y = y + model.b.reshape(1, -1, 1, 1)
    eps = 1e-5
    gamma, beta, r_mean, r_var = 1.0, 0.0, 0.0, 1.0
    y = gamma * (y - r_mean) / jnp.sqrt(r_var + eps) + beta
    return (jnp.maximum(y, 0.0),)


if __name__ == "__main__":
    key = jax.random.PRNGKey(0)
    k_in, k_mod = jax.random.split(key)

    # Small shapes consistent with the module's conv-backbone forward.
    N, C_IN, H, W = 2, 4, 16, 16
    visual_clip = jax.random.normal(k_in, (N, C_IN, H, W), jnp.float32)

    model = VisualClassifyPallas(c_in=C_IN, c_out=8, key=k_mod)

    out = model(visual_clip)
    out = jax.tree_util.tree_map(jax.block_until_ready, out)
    assert out[0].shape == (N, 8, H, W)

    # (a) tight check against the same-precision (bf16 in, f32 acc) jnp math.
    ref_same = _reference_same_math(model, visual_clip)
    assert jnp.allclose(out[0], ref_same, atol=1e-4, rtol=1e-4)

    # (b) loose check against the full-precision conv reference
    #     (tolerance accounts for bf16 matmul inputs).
    ref_f32 = _reference_f32(model, visual_clip)
    assert jnp.allclose(out[0], ref_f32[0], atol=1e-2, rtol=5e-2)

    print("KERNEL_OK")
</pallas_src>

<mosaic_0001>
module attributes {stable_mosaic.version = 11 : i64} {
  func.func @_fused_conv_bn_relu_kernel(%arg0: i32, %arg1: i32, %arg2: memref<1x4x384xbf16, #tpu.memory_space<vmem>>, %arg3: memref<9x8x4xbf16, #tpu.memory_space<vmem>>, %arg4: memref<8x1xf32, #tpu.memory_space<vmem>>, %arg5: memref<1x8x256xf32, #tpu.memory_space<vmem>>) attributes {dimension_semantics = [#tpu.dimension_semantics<parallel>, #tpu.dimension_semantics<parallel>], iteration_bounds = array<i64: 2, 1>, scalar_prefetch = 0 : i64, scratch_operands = 0 : i64, tpu.core_type = #tpu.core_type<tc>, window_params = [{transform_indices = @transform_0, window_bounds = array<i64: 1, 4, 384>}, {pipeline_mode = #tpu.pipeline_mode<synchronous>, transform_indices = @transform_1, window_bounds = array<i64: 9, 8, 4>}, {pipeline_mode = #tpu.pipeline_mode<synchronous>, transform_indices = @transform_2, window_bounds = array<i64: 8, 1>}, {transform_indices = @transform_3, window_bounds = array<i64: 1, 8, 256>}]} {
    %0 = tpu.iota {dimensions = array<i32: 1>} : vector<1x256xi32>
    %c0_i32 = arith.constant 0 : i32
    %1 = vector.broadcast %c0_i32 : i32 to vector<1x256xi32>
    %2 = arith.addi %1, %0 : vector<1x256xi32>
    %c16_i32 = arith.constant 16 : i32
    %c0_i32_0 = arith.constant 0 : i32
    %3 = arith.cmpi eq, %c16_i32, %c0_i32_0 : i32
    %c1_i32 = arith.constant 1 : i32
    %4 = arith.select %3, %c1_i32, %c16_i32 : i32
    %5 = vector.broadcast %4 : i32 to vector<1x256xi32>
    %6 = arith.remsi %2, %5 : vector<1x256xi32>
    %c0_i32_1 = arith.constant 0 : i32
    %7 = vector.broadcast %c0_i32_1 : i32 to vector<1x256xi32>
    %8 = arith.cmpi ne, %6, %7 : vector<1x256xi32>
    %c0_i32_2 = arith.constant 0 : i32
    %9 = vector.broadcast %c0_i32_2 : i32 to vector<1x256xi32>
    %10 = arith.cmpi slt, %6, %9 : vector<1x256xi32>
    %c0_i32_3 = arith.constant 0 : i32
    %11 = arith.cmpi slt, %4, %c0_i32_3 : i32
    %12 = vector.broadcast %11 : i1 to vector<1x256xi1>
    %13 = vector.broadcast %12 : vector<1x256xi1> to vector<1x256xi1>
    %14 = arith.xori %10, %13 : vector<1x256xi1>
    %15 = arith.andi %14, %8 : vector<1x256xi1>
    %16 = vector.broadcast %4 : i32 to vector<1x256xi32>
    %17 = arith.addi %6, %16 : vector<1x256xi32>
    %18 = arith.select %15, %17, %6 : vector<1x256xi1>, vector<1x256xi32>
    %cst = arith.constant 0.000000e+00 : f32
    %19 = vector.broadcast %cst : f32 to vector<8x256xf32>
    %cst_4 = arith.constant 0.000000e+00 : f32
    %20 = vector.broadcast %cst_4 : f32 to vector<8x256xf32>
    %c0 = arith.constant 0 : index
    %c0_5 = arith.constant 0 : index
    %c0_6 = arith.constant 0 : index
    %21 = vector.load %arg3[%c0, %c0_5, %c0_6] : memref<9x8x4xbf16, #tpu.memory_space<vmem>>, vector<1x8x4xbf16>
    %22 = vector.shape_cast %21 : vector<1x8x4xbf16> to vector<8x4xbf16>
    %c0_7 = arith.constant 0 : index
    %c0_8 = arith.constant 0 : index
    %c0_9 = arith.constant 0 : index
    %23 = vector.load %arg2[%c0_7, %c0_8, %c0_9] : memref<1x4x384xbf16, #tpu.memory_space<vmem>>, vector<1x4x256xbf16>
    %24 = vector.shape_cast %23 : vector<1x4x256xbf16> to vector<4x256xbf16>
    %cst_10 = arith.constant dense<0.000000e+00> : vector<8x256xf32>
    %25 = tpu.matmul %22, %24, %cst_10 {dimension_numbers = #tpu.dot_dimension_numbers<[1], [0], [0], [1], [0, 0, 1, 1], [], []>} : vector<8x4xbf16>, vector<4x256xbf16>, vector<8x256xf32> -> vector<8x256xf32>
    %26 = arith.addf %20, %25 : vector<8x256xf32>
    %c3 = arith.constant 3 : index
    %c0_11 = arith.constant 0 : index
    %c0_12 = arith.constant 0 : index
    %27 = vector.load %arg3[%c3, %c0_11, %c0_12] : memref<9x8x4xbf16, #tpu.memory_space<vmem>>, vector<1x8x4xbf16>
    %28 = vector.shape_cast %27 : vector<1x8x4xbf16> to vector<8x4xbf16>
    %c0_13 = arith.constant 0 : index
    %c0_14 = arith.constant 0 : index
    %c16 = arith.constant 16 : index
    %29 = vector.load %arg2[%c0_13, %c0_14, %c16] : memref<1x4x384xbf16, #tpu.memory_space<vmem>>, vector<1x4x256xbf16>
    %30 = vector.shape_cast %29 : vector<1x4x256xbf16> to vector<4x256xbf16>
    %cst_15 = arith.constant dense<0.000000e+00> : vector<8x256xf32>
    %31 = tpu.matmul %28, %30, %cst_15 {dimension_numbers = #tpu.dot_dimension_numbers<[1], [0], [0], [1], [0, 0, 1, 1], [], []>} : vector<8x4xbf16>, vector<4x256xbf16>, vector<8x256xf32> -> vector<8x256xf32>
    %32 = arith.addf %26, %31 : vector<8x256xf32>
    %c6 = arith.constant 6 : index
    %c0_16 = arith.constant 0 : index
    %c0_17 = arith.constant 0 : index
    %33 = vector.load %arg3[%c6, %c0_16, %c0_17] : memref<9x8x4xbf16, #tpu.memory_space<vmem>>, vector<1x8x4xbf16>
    %34 = vector.shape_cast %33 : vector<1x8x4xbf16> to vector<8x4xbf16>
    %c0_18 = arith.constant 0 : index
    %c0_19 = arith.constant 0 : index
    %c32 = arith.constant 32 : index
    %35 = vector.load %arg2[%c0_18, %c0_19, %c32] : memref<1x4x384xbf16, #tpu.memory_space<vmem>>, vector<1x4x256xbf16>
    %36 = vector.shape_cast %35 : vector<1x4x256xbf16> to vector<4x256xbf16>
    %cst_20 = arith.constant dense<0.000000e+00> : vector<8x256xf32>
    %37 = tpu.matmul %34, %36, %cst_20 {dimension_numbers = #tpu.dot_dimension_numbers<[1], [0], [0], [1], [0, 0, 1, 1], [], []>} : vector<8x4xbf16>, vector<4x256xbf16>, vector<8x256xf32> -> vector<8x256xf32>
    %38 = arith.addf %32, %37 : vector<8x256xf32>
    %c0_i32_21 = arith.constant 0 : i32
    %39 = vector.broadcast %c0_i32_21 : i32 to vector<1x256xi32>
    %40 = arith.cmpi eq, %18, %39 : vector<1x256xi32>
    %cst_22 = arith.constant 0.000000e+00 : f32
    %41 = vector.shape_cast %40 : vector<1x256xi1> to vector<1x256xi1>
    %42 = vector.broadcast %41 : vector<1x256xi1> to vector<8x256xi1>
    %43 = vector.broadcast %cst_22 : f32 to vector<8x256xf32>
    %44 = arith.select %42, %43, %38 : vector<8x256xi1>, vector<8x256xf32>
    %45 = arith.addf %19, %44 : vector<8x256xf32>
    %cst_23 = arith.constant 0.000000e+00 : f32
    %46 = vector.broadcast %cst_23 : f32 to vector<8x256xf32>
    %c1 = arith.constant 1 : index
    %c0_24 = arith.constant 0 : index
    %c0_25 = arith.constant 0 : index
    %47 = vector.load %arg3[%c1, %c0_24, %c0_25] : memref<9x8x4xbf16, #tpu.memory_space<vmem>>, vector<1x8x4xbf16>
    %48 = vector.shape_cast %47 : vector<1x8x4xbf16> to vector<8x4xbf16>
    %c0_26 = arith.constant 0 : index
    %c0_27 = arith.constant 0 : index
    %c1_28 = arith.constant 1 : index
    %49 = vector.load %arg2[%c0_26, %c0_27, %c1_28] : memref<1x4x384xbf16, #tpu.memory_space<vmem>>, vector<1x4x256xbf16>
    %50 = vector.shape_cast %49 : vector<1x4x256xbf16> to vector<4x256xbf16>
    %cst_29 = arith.constant dense<0.000000e+00> : vector<8x256xf32>
    %51 = tpu.matmul %48, %50, %cst_29 {dimension_numbers = #tpu.dot_dimension_numbers<[1], [0], [0], [1], [0, 0, 1, 1], [], []>} : vector<8x4xbf16>, vector<4x256xbf16>, vector<8x256xf32> -> vector<8x256xf32>
    %52 = arith.addf %46, %51 : vector<8x256xf32>
    %c4 = arith.constant 4 : index
    %c0_30 = arith.constant 0 : index
    %c0_31 = arith.constant 0 : index
    %53 = vector.load %arg3[%c4, %c0_30, %c0_31] : memref<9x8x4xbf16, #tpu.memory_space<vmem>>, vector<1x8x4xbf16>
    %54 = vector.shape_cast %53 : vector<1x8x4xbf16> to vector<8x4xbf16>
    %c0_32 = arith.constant 0 : index
    %c0_33 = arith.constant 0 : index
    %c17 = arith.constant 17 : index
    %55 = vector.load %arg2[%c0_32, %c0_33, %c17] : memref<1x4x384xbf16, #tpu.memory_space<vmem>>, vector<1x4x256xbf16>
    %56 = vector.shape_cast %55 : vector<1x4x256xbf16> to vector<4x256xbf16>
    %cst_34 = arith.constant dense<0.000000e+00> : vector<8x256xf32>
    %57 = tpu.matmul %54, %56, %cst_34 {dimension_numbers = #tpu.dot_dimension_numbers<[1], [0], [0], [1], [0, 0, 1, 1], [], []>} : vector<8x4xbf16>, vector<4x256xbf16>, vector<8x256xf32> -> vector<8x256xf32>
    %58 = arith.addf %52, %57 : vector<8x256xf32>
    %c7 = arith.constant 7 : index
    %c0_35 = arith.constant 0 : index
    %c0_36 = arith.constant 0 : index
    %59 = vector.load %arg3[%c7, %c0_35, %c0_36] : memref<9x8x4xbf16, #tpu.memory_space<vmem>>, vector<1x8x4xbf16>
    %60 = vector.shape_cast %59 : vector<1x8x4xbf16> to vector<8x4xbf16>
    %c0_37 = arith.constant 0 : index
    %c0_38 = arith.constant 0 : index
    %c33 = arith.constant 33 : index
    %61 = vector.load %arg2[%c0_37, %c0_38, %c33] : memref<1x4x384xbf16, #tpu.memory_space<vmem>>, vector<1x4x256xbf16>
    %62 = vector.shape_cast %61 : vector<1x4x256xbf16> to vector<4x256xbf16>
    %cst_39 = arith.constant dense<0.000000e+00> : vector<8x256xf32>
    %63 = tpu.matmul %60, %62, %cst_39 {dimension_numbers = #tpu.dot_dimension_numbers<[1], [0], [0], [1], [0, 0, 1, 1], [], []>} : vector<8x4xbf16>, vector<4x256xbf16>, vector<8x256xf32> -> vector<8x256xf32>
    %64 = arith.addf %58, %63 : vector<8x256xf32>
    %65 = arith.addf %45, %64 : vector<8x256xf32>
    %cst_40 = arith.constant 0.000000e+00 : f32
    %66 = vector.broadcast %cst_40 : f32 to vector<8x256xf32>
    %c2 = arith.constant 2 : index
    %c0_41 = arith.constant 0 : index
    %c0_42 = arith.constant 0 : index
    %67 = vector.load %arg3[%c2, %c0_41, %c0_42] : memref<9x8x4xbf16, #tpu.memory_space<vmem>>, vector<1x8x4xbf16>
    %68 = vector.shape_cast %67 : vector<1x8x4xbf16> to vector<8x4xbf16>
    %c0_43 = arith.constant 0 : index
    %c0_44 = arith.constant 0 : index
    %c2_45 = arith.constant 2 : index
    %69 = vector.load %arg2[%c0_43, %c0_44, %c2_45] : memref<1x4x384xbf16, #tpu.memory_space<vmem>>, vector<1x4x256xbf16>
    %70 = vector.shape_cast %69 : vector<1x4x256xbf16> to vector<4x256xbf16>
    %cst_46 = arith.constant dense<0.000000e+00> : vector<8x256xf32>
    %71 = tpu.matmul %68, %70, %cst_46 {dimension_numbers = #tpu.dot_dimension_numbers<[1], [0], [0], [1], [0, 0, 1, 1], [], []>} : vector<8x4xbf16>, vector<4x256xbf16>, vector<8x256xf32> -> vector<8x256xf32>
    %72 = arith.addf %66, %71 : vector<8x256xf32>
    %c5 = arith.constant 5 : index
    %c0_47 = arith.constant 0 : index
    %c0_48 = arith.constant 0 : index
    %73 = vector.load %arg3[%c5, %c0_47, %c0_48] : memref<9x8x4xbf16, #tpu.memory_space<vmem>>, vector<1x8x4xbf16>
    %74 = vector.shape_cast %73 : vector<1x8x4xbf16> to vector<8x4xbf16>
    %c0_49 = arith.constant 0 : index
    %c0_50 = arith.constant 0 : index
    %c18 = arith.constant 18 : index
    %75 = vector.load %arg2[%c0_49, %c0_50, %c18] : memref<1x4x384xbf16, #tpu.memory_space<vmem>>, vector<1x4x256xbf16>
    %76 = vector.shape_cast %75 : vector<1x4x256xbf16> to vector<4x256xbf16>
    %cst_51 = arith.constant dense<0.000000e+00> : vector<8x256xf32>
    %77 = tpu.matmul %74, %76, %cst_51 {dimension_numbers = #tpu.dot_dimension_numbers<[1], [0], [0], [1], [0, 0, 1, 1], [], []>} : vector<8x4xbf16>, vector<4x256xbf16>, vector<8x256xf32> -> vector<8x256xf32>
    %78 = arith.addf %72, %77 : vector<8x256xf32>
    %c8 = arith.constant 8 : index
    %c0_52 = arith.constant 0 : index
    %c0_53 = arith.constant 0 : index
    %79 = vector.load %arg3[%c8, %c0_52, %c0_53] : memref<9x8x4xbf16, #tpu.memory_space<vmem>>, vector<1x8x4xbf16>
    %80 = vector.shape_cast %79 : vector<1x8x4xbf16> to vector<8x4xbf16>
    %c0_54 = arith.constant 0 : index
    %c0_55 = arith.constant 0 : index
    %c34 = arith.constant 34 : index
    %81 = vector.load %arg2[%c0_54, %c0_55, %c34] : memref<1x4x384xbf16, #tpu.memory_space<vmem>>, vector<1x4x256xbf16>
    %82 = vector.shape_cast %81 : vector<1x4x256xbf16> to vector<4x256xbf16>
    %cst_56 = arith.constant dense<0.000000e+00> : vector<8x256xf32>
    %83 = tpu.matmul %80, %82, %cst_56 {dimension_numbers = #tpu.dot_dimension_numbers<[1], [0], [0], [1], [0, 0, 1, 1], [], []>} : vector<8x4xbf16>, vector<4x256xbf16>, vector<8x256xf32> -> vector<8x256xf32>
    %84 = arith.addf %78, %83 : vector<8x256xf32>
    %c15_i32 = arith.constant 15 : i32
    %85 = vector.broadcast %c15_i32 : i32 to vector<1x256xi32>
    %86 = arith.cmpi eq, %18, %85 : vector<1x256xi32>
    %cst_57 = arith.constant 0.000000e+00 : f32
    %87 = vector.shape_cast %86 : vector<1x256xi1> to vector<1x256xi1>
    %88 = vector.broadcast %87 : vector<1x256xi1> to vector<8x256xi1>
    %89 = vector.broadcast %cst_57 : f32 to vector<8x256xf32>
    %90 = arith.select %88, %89, %84 : vector<8x256xi1>, vector<8x256xf32>
    %91 = arith.addf %65, %90 : vector<8x256xf32>
    %c0_58 = arith.constant 0 : index
    %c0_59 = arith.constant 0 : index
    %92 = vector.load %arg4[%c0_58, %c0_59] : memref<8x1xf32, #tpu.memory_space<vmem>>, vector<8x1xf32>
    %93 = vector.broadcast %92 : vector<8x1xf32> to vector<8x256xf32>
    %94 = arith.addf %91, %93 : vector<8x256xf32>
    %cst_60 = arith.constant 0.000000e+00 : f32
    %95 = vector.broadcast %cst_60 : f32 to vector<8x256xf32>
    %96 = arith.maximumf %94, %95 : vector<8x256xf32>
    %c0_61 = arith.constant 0 : index
    %c0_62 = arith.constant 0 : index
    %c0_63 = arith.constant 0 : index
    %97 = vector.load %arg5[%c0_61, %c0_62, %c0_63] : memref<1x8x256xf32, #tpu.memory_space<vmem>>, vector<1x8x256xf32>
    %98 = vector.shape_cast %97 : vector<1x8x256xf32> to vector<8x256xf32>
    %99 = vector.shape_cast %96 : vector<8x256xf32> to vector<1x8x256xf32>
    tpu.vector_store %arg5[%c0_61, %c0_62, %c0_63], %99 {strides = array<i32>} : memref<1x8x256xf32, #tpu.memory_space<vmem>>, vector<1x8x256xf32>,
    return
  }
  func.func @transform_0(%arg0: i32, %arg1: i32) -> (i32, i32, i32) {
    %c0_i32 = arith.constant 0 : i32
    %c0_i32_0 = arith.constant 0 : i32
    %c0_i32_1 = arith.constant 0 : i32
    return %arg0, %c0_i32, %c0_i32_0 : i32, i32, i32
  }
  func.func @transform_1(%arg0: i32, %arg1: i32) -> (i32, i32, i32) {
    %c0_i32 = arith.constant 0 : i32
    %c0_i32_0 = arith.constant 0 : i32
    %c0_i32_1 = arith.constant 0 : i32
    %c0_i32_2 = arith.constant 0 : i32
    return %c0_i32, %c0_i32_0, %c0_i32_1 : i32, i32, i32
  }
  func.func @transform_2(%arg0: i32, %arg1: i32) -> (i32, i32) {
    %c0_i32 = arith.constant 0 : i32
    %c0_i32_0 = arith.constant 0 : i32
    %c0_i32_1 = arith.constant 0 : i32
    return %c0_i32, %c0_i32_0 : i32, i32
  }
  func.func @transform_3(%arg0: i32, %arg1: i32) -> (i32, i32, i32) {
    %c0_i32 = arith.constant 0 : i32
    %c0_i32_0 = arith.constant 0 : i32
    return %arg0, %c0_i32, %arg1 : i32, i32, i32
  }
}

</mosaic_0001>

<bundles_post_ra>
// kernel: a_call__.1
= control target key start
LH: loop header
LB: loop body
LE: loop exit
PB: predicated region body
PF: predicated region fallthrough
CT: control target
= control target key end

     0   :  { %s945_s12 = smov 0   ;;  %s947_s13 = smov 0   ;;  %s1065_s0 = inlined_call_operand.vmem [shape: bf16[2,4,384], index: 0, kind: input, shape index: {}]   ;;  %s1066_s1 = inlined_call_operand.vmem [shape: bf16[9,8,4], index: 1, kind: input, shape index: {}]   ;;  %s1067_s2 = inlined_call_operand.vmem [shape: f32[8,1], index: 2, kind: input, shape index: {}]   ;;  %s1068_s3 = inlined_call_operand.vmem [shape: f32[2,8,256], index: 3, kind: output, shape index: {}]  }
   0x1   :  { %s949_s14 = smov 0  }
   0x2 LB: > { %s25_s15 = sadd.s32 1, %s910_s13  ;;  %p824_p0 = scmp.ge.s32.totalorder %s914_s14, 1  ;;  %s914_s14 = sphi %s949_s14, %s13_s14   ;;  %s910_s13 = sphi %s947_s13, %s1070_s13   ;;  %s906_s12 = sphi %s945_s12, %s1069_s12  }
   0x3   : > { %p27_p1 = scmp.ge.s32.totalorder %s25_s15, 2  ;;  %p151_p2 = scmp.lt.s32.totalorder %s914_s14, 3 }
   0x5   : > { %s1072_s15 = smov (%p27_p1, %s25_s15), 0  ;;  %p152_p3 = pnand %p824_p0, %p151_p2 }
   0x6   : > { %p179_p4 = scmp.lt.s32.totalorder (!%p152_p3), %s906_s12, 1  ;;  %s916_s20 = smov (!%p152_p3), 112  }
   0x7   : > { %155 = sbr.rel (%p152_p3) target bundleno = 354 (0x162), region = 32  ;;  %s917_s21 = smov (!%p152_p3), 96  }
   0x8   : > { %s918_s22 = smov (!%p152_p3), 111   ;;  %s919_s23 = smov (!%p152_p3), 127  }
   0x9   : > { %s920_s24 = smov (!%p152_p3), 95   ;;  %s921_s25 = smov (!%p152_p3), 110  }
   0xa   : > { %s922_s26 = smov (!%p152_p3), 126   ;;  %s923_s27 = smov (!%p152_p3), 94  }
   0xc   : > { %s1074_s12 = smov (!%p179_p4, %s906_s12), 1  ;;  %vm248_vm0 = vcmask 1041408   ;;  %v222_v35 = vld [vmem:[%s1066_s1] sm:$0xf]  ;;  %vm244_vm1 = vcmask 31744   ;;  %vm335_vm2 = vcmask 785408  }
   0xd   : > { %s857_s16 = smul.u32 6, %s1074_s12  ;;  %vm241_vm3 = vcmask 916480   ;;  %v828_v47 = vld [vmem:[%s1066_s1 + $0xc] sm:$0xf]  ;;  %vm404_vm4 = vcmask 908288   ;;  %vm455_vm5 = vcmask 1039360  }
   0xe   : > { %v833_v55 = vld [vmem:[%s1066_s1 + $0x18] sm:$0xf]  ;;  %v837_v59 = vld [vmem:[%s1066_s1 + $0x10] sm:$0xf]  ;;  %vm510_vm6 = vcmask 777216   ;;  %vm571_vm7 = vcmask 900096  }
   0xf   : > { %s969_s19 = scalar_lea.vmem %s1065_s0, %s857_s16  ;;  %vm622_vm8 = vcmask 1031168   ;;  %vm677_vm9 = vcmask 769024  }
  0x10   : > { %v226_v0 = vld [vmem:[%s969_s19] sm:$0x3f] }
  0x11   : > { %228 = vst [vmem:[#allocation1] ss:$4 sm:$0xff] %v226_v0  ;;  %v223_v1 = vld [vmem:[%s969_s19] sm:$0xf] }
  0x12   : > { %v320_v5 = vld [vmem:[%s969_s19] sm:$0x3f] }
  0x13   : > { %v387_v8 = vld [vmem:[%s969_s19] sm:$0x3f] }
  0x14   : > { %v495_v15 = vld [vmem:[%s969_s19] sm:$0x3f] }
  0x15   : > { %v554_v19 = vld [vmem:[%s969_s19] sm:$0x3f] }
  0x16   : > { %v662_v26 = vld [vmem:[%s969_s19] sm:$0x3f] }
  0x18   : > { %v229_v2 = vld.sshfl [vmem:[#allocation1] sm:$0xff pattern:$0x73625140]  ;;  %v233_v3 = vld.sshfl [vmem:[#allocation1 + $0x10] sm:$0xff pattern:$0x73625140] }
  0x19   : > { %235 = vrot.lane.b32.xlu0 %v229_v2, %s916_s20  ;;  %239 = vrot.lane.b32.xlu1 %v233_v3, %s916_s20  ;;  %v231_v4 = vld.sshfl [vmem:[#allocation1 + $0x8] sm:$0xff pattern:$0x73625140] }
  0x1a   : > { %282 = vst [vmem:[#allocation1] ss:$4 sm:$0xff] %v223_v1 }
  0x21   : > { %237 = vrot.lane.b32.xlu0 %v231_v4, %s916_s20  ;;  %v974_v6 = vld.sshfl [vmem:[#allocation1] sm:$0xff pattern:$0x73625140]  ;;  %v976_v7 = vld.sshfl [vmem:[#allocation1 + $0x8] sm:$0xff pattern:$0x73625140] }
  0x22   : > { %322 = vst [vmem:[#allocation1] ss:$4 sm:$0xff] %v320_v5  ;;  %v288_v33 = vsel %vm248_vm0, %v974_v6, 0  ;;  %v290_v34 = vsel %vm248_vm0, %v976_v7, 0  ;;  %v836_v4 = vld [vmem:[%s1066_s1 + $0x4] sm:$0xf] }
  0x23   : > { %299 = vmatpush.bf16.msra.mxu2 %v288_v33  ;;  %312 = vmatpush.bf16.msra.mxu3 %v290_v34 }
  0x26   : > { %831 = vmatmul.msk.bf16.vlgmr.msra.gmra.mxu2 %vm244_vm1, %v222_v35  ;;  %832 = vmatmul.msk.bf16.vlgmr.msra.gmra.mxu3 %vm244_vm1, %v222_v35 }
  0x29   : > { %v323_v9 = vld.sshfl [vmem:[#allocation1] sm:$0xff pattern:$0x73625140]  ;;  %v325_v10 = vld.sshfl [vmem:[#allocation1 + $0x8] sm:$0xff pattern:$0x73625140] }
  0x2a   : > { %329 = vrot.lane.b32.xlu1 %v323_v9, %s917_s21  ;;  %v327_v11 = vld.sshfl [vmem:[#allocation1 + $0x10] sm:$0xff pattern:$0x73625140]  ;;  %331 = vrot.lane.b32.xlu2 %v325_v10, %s917_s21 }
  0x2b   : > { %391 = vst [vmem:[#allocation1] ss:$4 sm:$0xff] %v387_v8 }
  0x32   : > { %v396_v12 = vld.sshfl [vmem:[#allocation1 + $0x10] sm:$0xff pattern:$0x73625140]  ;;  %v394_v13 = vld.sshfl [vmem:[#allocation1 + $0x8] sm:$0xff pattern:$0x73625140]  ;;  %333 = vrot.lane.b32.xlu2 %v327_v11, %s917_s21 }
  0x33   : > { %400 = vrot.lane.b32.xlu1 %v394_v13, %s918_s22  ;;  %v392_v14 = vld.sshfl [vmem:[#allocation1] sm:$0xff pattern:$0x73625140]  ;;  %v842_v11 = vld [vmem:[%s1066_s1 + $0x1c] sm:$0xf]  ;;  %v924_v13 = vmov 0  }
  0x34   : > { %398 = vrot.lane.b32.xlu0 %v392_v14, %s918_s22  ;;  %442 = vst [vmem:[#allocation1] ss:$4 sm:$0xff] %v387_v8 }
  0x35   : > { %891 = vset.pattern.permute.xlu0 %v924_v13 }
  0x3a   : > { %402 = vrot.lane.b32.xlu2 %v396_v12, %s918_s22  ;;  %v727_v12 = vld [vmem:[%s1067_s2] sm:$0xff] }
  0x3b   : > { %v445_v16 = vld.sshfl [vmem:[#allocation1 + $0x8] sm:$0xff pattern:$0x73625140]  ;;  %v447_v17 = vld.sshfl [vmem:[#allocation1 + $0x10] sm:$0xff pattern:$0x73625140] }
  0x3c   : > { %451 = vrot.lane.b32.xlu1 %v445_v16, %s919_s23  ;;  %v443_v18 = vld.sshfl [vmem:[#allocation1] sm:$0xff pattern:$0x73625140] }
  0x3d   : > { %449 = vrot.lane.b32.xlu0 %v443_v18, %s919_s23  ;;  %497 = vst [vmem:[#allocation1] ss:$4 sm:$0xff] %v495_v15 }
  0x42   : > { %453 = vrot.lane.b32.xlu2 %v447_v17, %s919_s23 }
  0x44   : > { %v500_v20 = vld.sshfl [vmem:[#allocation1 + $0x8] sm:$0xff pattern:$0x73625140]  ;;  %v502_v21 = vld.sshfl [vmem:[#allocation1 + $0x10] sm:$0xff pattern:$0x73625140] }
  0x45   : > { %506 = vrot.lane.b32.xlu1 %v500_v20, %s920_s24  ;;  %v498_v22 = vld.sshfl [vmem:[#allocation1] sm:$0xff pattern:$0x73625140] }
  0x46   : > { %504 = vrot.lane.b32.xlu0 %v498_v22, %s920_s24  ;;  %558 = vst [vmem:[#allocation1] ss:$4 sm:$0xff] %v554_v19 }
  0x4a   : > { %508 = vrot.lane.b32.xlu2 %v502_v21, %s920_s24  ;;  %v846_v21 = vld [vmem:[%s1066_s1 + $0x14] sm:$0xf] }
  0x4d   : > { %v561_v23 = vld.sshfl [vmem:[#allocation1 + $0x8] sm:$0xff pattern:$0x73625140]  ;;  %v563_v24 = vld.sshfl [vmem:[#allocation1 + $0x10] sm:$0xff pattern:$0x73625140] }
  0x4e   : > { %567 = vrot.lane.b32.xlu1 %v561_v23, %s921_s25  ;;  %v559_v25 = vld.sshfl [vmem:[#allocation1] sm:$0xff pattern:$0x73625140] }
  0x4f   : > { %565 = vrot.lane.b32.xlu0 %v559_v25, %s921_s25  ;;  %609 = vst [vmem:[#allocation1] ss:$4 sm:$0xff] %v554_v19 }
  0x52   : > { %569 = vrot.lane.b32.xlu2 %v563_v24, %s921_s25  ;;  %s856_s25 = sshll.u32 %s1074_s12, 4 }
  0x53   : > { %s192_s28 = scalar_lea.vmem %s1068_s3, %s856_s25 }
  0x56   : > { %v614_v27 = vld.sshfl [vmem:[#allocation1 + $0x10] sm:$0xff pattern:$0x73625140]  ;;  %v612_v28 = vld.sshfl [vmem:[#allocation1 + $0x8] sm:$0xff pattern:$0x73625140] }
  0x57   : > { %618 = vrot.lane.b32.xlu1 %v612_v28, %s922_s26  ;;  %v610_v29 = vld.sshfl [vmem:[#allocation1] sm:$0xff pattern:$0x73625140] }
  0x58   : > { %616 = vrot.lane.b32.xlu0 %v610_v29, %s922_s26  ;;  %664 = vst [vmem:[#allocation1] ss:$4 sm:$0xff] %v662_v26  ;;  %v845_v29 = vld [vmem:[%s1066_s1 + $0x8] sm:$0xf] }
  0x5a   : > { %620 = vrot.lane.b32.xlu2 %v614_v27, %s922_s26 }
  0x5f   : > { %v667_v30 = vld.sshfl [vmem:[#allocation1 + $0x8] sm:$0xff pattern:$0x73625140]  ;;  %v665_v31 = vld.sshfl [vmem:[#allocation1] sm:$0xff pattern:$0x73625140] }
  0x60   : > { %673 = vrot.lane.b32.xlu1 %v667_v30, %s923_s27  ;;  %671 = vrot.lane.b32.xlu0 %v665_v31, %s923_s27  ;;  %v669_v32 = vld.sshfl [vmem:[#allocation1 + $0x10] sm:$0xff pattern:$0x73625140] }
  0x62   : > { %675 = vrot.lane.b32.xlu2 %v669_v32, %s923_s27 }
  0x68   : > { %730 = vperm.xlu0 %891, %v727_v12  }
  0x84   : > { %v332_v36 = vpop.permute.xlu2 %331 }
  0x8b   : > { %v236_v37 = vpop.permute.xlu0 %235  ;;  %v240_v39 = vpop.permute.xlu1 %239 }
  0x8c   : > { %v334_v38 = vpop.permute.xlu2 %333 }
  0x8d   : > { %v337_v40 = vsel %vm335_vm2, %v332_v36, %v334_v38 }
  0x8e   : > { %v345_v44 = vsel %vm248_vm0, %v337_v40, 0 }
  0x93   : > { %v238_v41 = vpop.permute.xlu0 %237 }
  0x94   : > { %v242_v42 = vsel %vm241_vm3, %v236_v37, %v238_v41  ;;  %v243_v43 = vsel %vm241_vm3, %v238_v41, %v240_v39  ;;  %v403_v51 = vpop.permute.xlu2 %402  ;;  %v851_v37 = vld [vmem:[%s1066_s1 + $0x20] sm:$0xf] }
  0x95   : > { %v250_v45 = vsel %vm248_vm0, %v242_v42, 0  ;;  %v253_v46 = vsel %vm248_vm0, %v243_v43, 0 }
  0x96   : > { %262 = vmatpush.bf16.msra.mxu0 %v250_v45  ;;  %275 = vmatpush.bf16.msra.mxu1 %v253_v46 }
  0x99   : > { %829 = vmatmul.msk.bf16.vlgmr.msra.gmra.mxu0 %vm244_vm1, %v828_v47  ;;  %830 = vmatmul.msk.bf16.vlgmr.msra.gmra.mxu1 %vm244_vm1, %v828_v47 }
  0x9a   : > { %367 = vmatpush.bf16.msrb.mxu1 %v345_v44 }
  0x9c   : > { %v330_v48 = vpop.permute.xlu1 %329  ;;  %v454_v60 = vpop.permute.xlu2 %453 }
  0x9d   : > { %v336_v49 = vsel %vm335_vm2, %v330_v48, %v332_v36 }
  0x9e   : > { %v342_v50 = vsel %vm248_vm0, %v336_v49, 0 }
  0x9f   : > { %354 = vmatpush.bf16.msrb.mxu0 %v342_v50 }
  0xa4   : > { %v509_v3 = vpop.permute.xlu2 %508 }
  0xa5   : > { %v401_v52 = vpop.permute.xlu1 %400 }
  0xa6   : > { %v399_v53 = vpop.permute.xlu0 %398  ;;  %v406_v54 = vsel %vm404_vm4, %v401_v52, %v403_v51 }
  0xa7   : > { %v405_v56 = vsel %vm404_vm4, %v399_v53, %v401_v52  ;;  %v414_v57 = vsel %vm248_vm0, %v406_v54, 0 }
  0xa8   : > { %v411_v58 = vsel %vm248_vm0, %v405_v56, 0  ;;  %436 = vmatpush.bf16.msrb.mxu3 %v414_v57 }
  0xa9   : > { %423 = vmatpush.bf16.msrb.mxu2 %v411_v58  ;;  %834 = vmatmul.msk.bf16.vlgmr.msrb.gmra.mxu0 %vm244_vm1, %v833_v55  ;;  %v301_v38 = vpop.f32.mrf.mxu2  ;;  %v314_v39 = vpop.f32.mrf.mxu3 }
  0xaa   : > { %835 = vmatmul.msk.bf16.vlgmr.msrb.gmra.mxu1 %vm244_vm1, %v833_v55 }
  0xab   : > { %839 = vmatmul.msk.bf16.vlgmr.msrb.gmra.mxu3 %vm244_vm1, %v837_v59 }
  0xac   : > { %838 = vmatmul.msk.bf16.vlgmr.msrb.gmra.mxu2 %vm244_vm1, %v837_v59  ;;  %v570_v14 = vpop.permute.xlu2 %569 }
  0xae   : > { %v452_v61 = vpop.permute.xlu1 %451 }
  0xaf   : > { %v457_v62 = vsel %vm455_vm5, %v452_v61, %v454_v60  ;;  %v450_v63 = vpop.permute.xlu0 %449  ;;  %v195_v60 = vlaneseq }
  0xb0   : > { %v465_v0 = vsel %vm248_vm0, %v457_v62, 0  ;;  %v456_v1 = vsel %vm455_vm5, %v450_v63, %v452_v61 }
  0xb1   : > { %v462_v2 = vsel %vm248_vm0, %v456_v1, 0  ;;  %487 = vmatpush.bf16.msra.mxu1 %v465_v0  ;;  %v303_v40 = vpop.f32.mrf.mxu2  ;;  %v316_v41 = vpop.f32.mrf.mxu3  ;;  %v196_v0 = vand.u32 127, %v195_v60 }
  0xb2   : > { %474 = vmatpush.bf16.msra.mxu0 %v462_v2 }
  0xb3   : > { %v197_v2 = vadd.s32 128, %v196_v0 }
  0xb4   : > { %v621_v22 = vpop.permute.xlu2 %620 }
  0xb7   : > { %v507_v5 = vpop.permute.xlu1 %506 }
  0xb8   : > { %v512_v6 = vsel %vm510_vm6, %v507_v5, %v509_v3  ;;  %v505_v7 = vpop.permute.xlu0 %504 }
  0xb9   : > { %v520_v8 = vsel %vm248_vm0, %v512_v6, 0  ;;  %v511_v9 = vsel %vm510_vm6, %v505_v7, %v507_v5  ;;  %840 = vmatmul.msk.bf16.vlgmr.msra.gmra.mxu0 %vm244_vm1, %v836_v4  ;;  %v202_v5 = vand.u32 15, %v196_v0  ;;  %v209_v7 = vand.u32 15, %v197_v2 }
  0xba   : > { %v517_v10 = vsel %vm248_vm0, %v511_v9, 0  ;;  %542 = vmatpush.bf16.msra.mxu3 %v520_v8  ;;  %841 = vmatmul.msk.bf16.vlgmr.msra.gmra.mxu1 %vm244_vm1, %v836_v4 }
  0xbb   : > { %529 = vmatpush.bf16.msra.mxu2 %v517_v10  ;;  %vm375_vm10 = vcmp.eq.s32.totalorder %v202_v5, 0  ;;  %vm376_vm11 = vcmp.eq.s32.totalorder %v209_v7, 0  ;;  %vm717_vm12 = vcmp.eq.s32.totalorder %v202_v5, 15  ;;  %vm718_vm13 = vcmp.eq.s32.totalorder %v209_v7, 15 }
  0xbc   : > { %v676_v30 = vpop.permute.xlu2 %675 }
  0xbd   : > { %844 = vmatmul.msk.bf16.vlgmr.msra.gmra.mxu3 %vm244_vm1, %v842_v11 }
  0xbe   : > { %843 = vmatmul.msk.bf16.vlgmr.msra.gmra.mxu2 %vm244_vm1, %v842_v11 }
  0xc0   : > { %v568_v15 = vpop.permute.xlu1 %567 }
  0xc1   : > { %v573_v16 = vsel %vm571_vm7, %v568_v15, %v570_v14  ;;  %v566_v17 = vpop.permute.xlu0 %565 }
  0xc2   : > { %v581_v18 = vsel %vm248_vm0, %v573_v16, 0  ;;  %v572_v19 = vsel %vm571_vm7, %v566_v17, %v568_v15 }
  0xc3   : > { %v578_v20 = vsel %vm248_vm0, %v572_v19, 0  ;;  %603 = vmatpush.bf16.msrb.mxu1 %v581_v18 }
  0xc4   : > { %590 = vmatpush.bf16.msrb.mxu0 %v578_v20 }
  0xc9   : > { %v619_v23 = vpop.permute.xlu1 %618  ;;  %847 = vmatmul.msk.bf16.vlgmr.msrb.gmra.mxu0 %vm244_vm1, %v846_v21 }
  0xca   : > { %v624_v24 = vsel %vm622_vm8, %v619_v23, %v621_v22  ;;  %v617_v25 = vpop.permute.xlu0 %616  ;;  %848 = vmatmul.msk.bf16.vlgmr.msrb.gmra.mxu1 %vm244_vm1, %v846_v21 }
  0xcb   : > { %v632_v26 = vsel %vm248_vm0, %v624_v24, 0  ;;  %v623_v27 = vsel %vm622_vm8, %v617_v25, %v619_v23 }
  0xcc   : > { %v629_v28 = vsel %vm248_vm0, %v623_v27, 0  ;;  %654 = vmatpush.bf16.msrb.mxu3 %v632_v26 }
  0xcd   : > { %641 = vmatpush.bf16.msrb.mxu2 %v629_v28 }
  0xcf   : > { %850 = vmatmul.msk.bf16.vlgmr.msrb.gmra.mxu3 %vm244_vm1, %v845_v29 }
  0xd0   : > { %849 = vmatmul.msk.bf16.vlgmr.msrb.gmra.mxu2 %vm244_vm1, %v845_v29 }
  0xd2   : > { %v674_v31 = vpop.permute.xlu1 %673  ;;  %v672_v32 = vpop.permute.xlu0 %671 }
  0xd3   : > { %v679_v33 = vsel %vm677_vm9, %v674_v31, %v676_v30  ;;  %v678_v34 = vsel %vm677_vm9, %v672_v32, %v674_v31 }
  0xd4   : > { %v687_v35 = vsel %vm248_vm0, %v679_v33, 0  ;;  %v684_v36 = vsel %vm248_vm0, %v678_v34, 0 }
  0xd5   : > { %696 = vmatpush.bf16.msra.mxu0 %v684_v36  ;;  %709 = vmatpush.bf16.msra.mxu1 %v687_v35 }
  0xd9   : > { %852 = vmatmul.msk.bf16.vlgmr.msra.gmra.mxu0 %vm244_vm1, %v851_v37 }
  0xda   : > { %853 = vmatmul.msk.bf16.vlgmr.msra.gmra.mxu1 %vm244_vm1, %v851_v37  ;;  %v731_v28 = vpop.permute.xlu0 %730 }
 0x116   : > { %v264_v42 = vpop.f32.mrf.mxu0  ;;  %v277_v43 = vpop.f32.mrf.mxu1 }
 0x117   : > { %v302_v6 = vadd.f32 %v301_v38, %v264_v42  ;;  %v315_v8 = vadd.f32 %v314_v39, %v277_v43 }
 0x11e   : > { %v266_v44 = vpop.f32.mrf.mxu0  ;;  %v279_v45 = vpop.f32.mrf.mxu1 }
 0x126   : > { %v356_v46 = vpop.f32.mrf.mxu0 }
 0x127   : > { %v369_v47 = vpop.f32.mrf.mxu1  ;;  %v373_v11 = vadd.f32 %v356_v46, %v302_v6 }
 0x128   : > { %v374_v14 = vadd.f32 %v369_v47, %v315_v8 }
 0x129   : > { %v381_v20 = vsel %vm375_vm10, 0.0, %v373_v11 }
 0x12a   : > { %v382_v23 = vsel %vm376_vm11, 0.0, %v374_v14 }
 0x12e   : > { %v438_v48 = vpop.f32.mrf.mxu3  ;;  %v358_v49 = vpop.f32.mrf.mxu0 }
 0x12f   : > { %v425_v50 = vpop.f32.mrf.mxu2  ;;  %v371_v51 = vpop.f32.mrf.mxu1 }
 0x136   : > { %v440_v52 = vpop.f32.mrf.mxu3  ;;  %v476_v53 = vpop.f32.mrf.mxu0 }
 0x137   : > { %v427_v54 = vpop.f32.mrf.mxu2  ;;  %v489_v55 = vpop.f32.mrf.mxu1  ;;  %v477_v9 = vadd.f32 %v476_v53, %v425_v50 }
 0x138   : > { %v490_v12 = vadd.f32 %v489_v55, %v438_v48 }
 0x13e   : > { %v478_v56 = vpop.f32.mrf.mxu0 }
 0x13f   : > { %v491_v57 = vpop.f32.mrf.mxu1 }
 0x140   : > { %v544_v58 = vpop.f32.mrf.mxu3 }
 0x141   : > { %v531_v59 = vpop.f32.mrf.mxu2  ;;  %v549_v16 = vadd.f32 %v544_v58, %v490_v12 }
 0x142   : > { %v548_v15 = vadd.f32 %v531_v59, %v477_v9 }
 0x143   : > { %v551_v26 = vadd.f32 %v549_v16, %v382_v23 }
 0x144   : > { %v550_v24 = vadd.f32 %v548_v15, %v381_v20 }
 0x146   : > { %v592_v61 = vpop.f32.mrf.mxu0 }
 0x147   : > { %v605_v62 = vpop.f32.mrf.mxu1 }
 0x148   : > { %v546_v63 = vpop.f32.mrf.mxu3 }
 0x149   : > { %v533_v1 = vpop.f32.mrf.mxu2 }
 0x14e   : > { %v594_v3 = vpop.f32.mrf.mxu0 }
 0x14f   : > { %v607_v4 = vpop.f32.mrf.mxu1 }
 0x152   : > { %v656_v10 = vpop.f32.mrf.mxu3 }
 0x153   : > { %v643_v13 = vpop.f32.mrf.mxu2  ;;  %v657_v18 = vadd.f32 %v656_v10, %v605_v62 }
 0x154   : > { %v644_v17 = vadd.f32 %v643_v13, %v592_v61 }
 0x156   : > { %v698_v19 = vpop.f32.mrf.mxu0 }
 0x157   : > { %v715_v21 = vadd.f32 %v698_v19, %v644_v17  ;;  %v711_v22 = vpop.f32.mrf.mxu1 }
 0x158   : > { %v716_v25 = vadd.f32 %v711_v22, %v657_v18 }
 0x159   : > { %v723_v27 = vsel %vm717_vm12, 0.0, %v715_v21 }
 0x15a   : > { %v724_v29 = vsel %vm718_vm13, 0.0, %v716_v25  ;;  %v658_v30 = vpop.f32.mrf.mxu3  ;;  %v725_v31 = vadd.f32 %v723_v27, %v550_v24 }
 0x15b   : > { %v645_v32 = vpop.f32.mrf.mxu2  ;;  %v726_v33 = vadd.f32 %v724_v29, %v551_v26 }
 0x15c   : > { %v733_v34 = vadd.f32 %v731_v28, %v725_v31 }
 0x15d   : > { %v734_v35 = vadd.f32 %v731_v28, %v726_v33 }
 0x15e   : > { %v735_v36 = vmax.f32 %v733_v34, 0.0  ;;  %v700_v37 = vpop.f32.mrf.mxu0 }
 0x15f   : > { %v736_v38 = vmax.f32 %v734_v35, 0.0  ;;  %v713_v39 = vpop.f32.mrf.mxu1 }
 0x160   : > { %737 = vst [vmem:[%s192_s28] sm:$0xff] %v735_v36 }
 0x161   : > { %738 = vst [vmem:[%s192_s28 + $0x8] sm:$0xff] %v736_v38 }
 0x162 PF: > { %s13_s14 = sadd.s32 1, %s914_s14   ;;  %s1069_s12 = smov %s910_s13 }
 0x163   : > { %p10_p5 = scmp.ge.s32.totalorder %s13_s14, 4   ;;  %s1070_s13 = smov %s1072_s15 }
 0x165   :  { %12 = sbr.rel (!%p10_p5) target bundleno = 2 (0x2), region = 70 }

</bundles_post_ra>
